<compile_context>
chip_gen: v7x
topology: tpu7x:2x2x1
jax: 0.10.0
libtpu: 0.0.40
codegen_flags: <defaults>
</compile_context>

<pallas_src>
import functools

import jax
import jax.numpy as jnp
from jax import lax
from jax.experimental import pallas as pl
from jax.experimental.pallas import tpu as pltpu

EPS = 1e-5     # nn.GroupNorm default eps
GROUPS = 32    # nn.GroupNorm(32, channels)


def _pick_tile(n, candidates):
    for c in candidates:
        if n % c == 0:
            return c
    return n


def _vmem_limit(*nbytes):
    # working set (blocks + scratch) with generous headroom for double buffering,
    # clamped to stay well inside every generation's physical VMEM (64 MiB on v7x).
    est = sum(nbytes)
    return int(min(max(4 * est, 16 * 1024 * 1024), 48 * 1024 * 1024))


# ----------------------------------------------------------------------------------------
# Stage 1: GroupNorm statistics. x viewed as (B, G, cs*N); tiled lane-reduction per group.
# ----------------------------------------------------------------------------------------
def gn_stats_kernel(x_ref, mean_ref, rstd_ref, sum_sc, sq_sc, *, inv_count):
    t = pl.program_id(1)

    @pl.when(t == 0)
    def _init():
        sum_sc[...] = jnp.zeros_like(sum_sc)
        sq_sc[...] = jnp.zeros_like(sq_sc)

    xg = x_ref[0]                                            # (G, tm) f32
    sum_sc[...] += jnp.sum(xg, axis=1, keepdims=True)        # (G, 1)
    sq_sc[...] += jnp.sum(xg * xg, axis=1, keepdims=True)    # (G, 1)

    @pl.when(t == pl.num_programs(1) - 1)
    def _finalize():
        mean = sum_sc[...] * inv_count
        # single-pass E[x^2] - mean^2 kept in f32; clamp guards tiny negative values
        # from cancellation (activations here are zero-mean-ish so this is benign).
        var = jnp.maximum(sq_sc[...] * inv_count - mean * mean, 0.0)
        mean_ref[0] = mean
        rstd_ref[0] = lax.rsqrt(var + EPS)


# ----------------------------------------------------------------------------------------
# Stage 2: GroupNorm apply (per-channel scale/shift) + q/k/v 1x1 convs (channel mixing).
#          q is pre-scaled by C**-0.5; k is stored transposed (B, N, C).
# ----------------------------------------------------------------------------------------
def qkv_kernel(x_ref, scale_ref, shift_ref,
               wq_ref, bq_ref, wk_ref, bk_ref, wv_ref, bv_ref,
               q_ref, kt_ref, v_ref, *, q_scale):
    x = x_ref[0]                                             # (C, tn) f32
    h = (x * scale_ref[0] + shift_ref[0]).astype(jnp.bfloat16)

    q = jnp.dot(wq_ref[...], h, preferred_element_type=jnp.float32) + bq_ref[...]
    k = jnp.dot(wk_ref[...], h, preferred_element_type=jnp.float32) + bk_ref[...]
    v = jnp.dot(wv_ref[...], h, preferred_element_type=jnp.float32) + bv_ref[...]

    q_ref[0] = (q * q_scale).astype(jnp.bfloat16)            # (C, tn)
    kt_ref[0] = k.T.astype(jnp.bfloat16)                     # (tn, C)  transpose once here
    v_ref[0] = v.astype(jnp.bfloat16)                        # (C, tn)


# ----------------------------------------------------------------------------------------
# Stage 3: flash-style spatial self-attention + proj_out + residual.
#          Scores are kept transposed (tkv, tq) so the online-softmax state is (1, tq) and
#          rescales broadcast over the channel/sublane axis of the (C, tq) accumulator.
# ----------------------------------------------------------------------------------------
def flash_attn_kernel(x_ref, q_ref, kt_ref, v_ref, wp_ref, bp_ref, o_ref,
                      m_sc, l_sc, acc_sc):
    kv = pl.program_id(2)

    @pl.when(kv == 0)
    def _init():
        m_sc[...] = jnp.full_like(m_sc, -jnp.inf)
        l_sc[...] = jnp.zeros_like(l_sc)
        acc_sc[...] = jnp.zeros_like(acc_sc)

    q = q_ref[0]                                             # (C, tq)   bf16 (pre-scaled)
    kt = kt_ref[0]                                           # (tkv, C)  bf16
    v = v_ref[0]                                             # (C, tkv)  bf16

    # logits (transposed): s[m, n] = k[:, m] . q[:, n]  ->  (tkv, tq), f32 accumulation
    s = jnp.dot(kt, q, preferred_element_type=jnp.float32)

    m_prev = m_sc[...]                                       # (1, tq)
    m_new = jnp.maximum(m_prev, jnp.max(s, axis=0, keepdims=True))
    alpha = jnp.exp(m_prev - m_new)                          # (1, tq)
    p = jnp.exp(s - m_new)                                   # (tkv, tq) f32

    l_sc[...] = alpha * l_sc[...] + jnp.sum(p, axis=0, keepdims=True)
    pv = jnp.dot(v, p.astype(jnp.bfloat16),
                 preferred_element_type=jnp.float32)         # (C, tq)
    acc_sc[...] = alpha * acc_sc[...] + pv
    m_sc[...] = m_new

    @pl.when(kv == pl.num_programs(2) - 1)
    def _finalize():
        inv_l = pl.reciprocal(l_sc[...], approx=True)        # EUP slot; frees the VPU
        h_out = (acc_sc[...] * inv_l).astype(jnp.bfloat16)   # (C, tq)
        proj = jnp.dot(wp_ref[...], h_out, preferred_element_type=jnp.float32)
        o_ref[0] = (x_ref[0] + proj + bp_ref[...]).astype(o_ref.dtype)


# ----------------------------------------------------------------------------------------
# Wrapper
# ----------------------------------------------------------------------------------------
def attention_block(x_nchw, params):
    """x_nchw: (B, C, H, W) float32 -> (B, C, H, W) float32."""
    B, C, H, W = x_nchw.shape
    assert C % GROUPS == 0, "GroupNorm(32, C) requires C % 32 == 0"
    N = H * W
    G = GROUPS
    cs = C // G

    x_tok = x_nchw.reshape(B, C, N)          # free reshape: channels on sublanes, N on lanes

    # ---------------- stage 1: GroupNorm stats ----------------
    M = cs * N
    x_grp = x_tok.reshape(B, G, M)           # free reshape (contiguous)
    tm = _pick_tile(M, (512, 256, 128))
    gstat_spec = pl.BlockSpec((1, G, 1), lambda b, t: (b, 0, 0))

    mean_g, rstd_g = pl.pallas_call(
        functools.partial(gn_stats_kernel, inv_count=1.0 / M),
        out_shape=(jax.ShapeDtypeStruct((B, G, 1), jnp.float32),
                   jax.ShapeDtypeStruct((B, G, 1), jnp.float32)),
        grid_spec=pltpu.PrefetchScalarGridSpec(
            num_scalar_prefetch=0,
            grid=(B, M // tm),
            in_specs=[pl.BlockSpec((1, G, tm), lambda b, t: (b, 0, t))],
            out_specs=(gstat_spec, gstat_spec),
            scratch_shapes=[pltpu.VMEM((G, 1), jnp.float32),
                            pltpu.VMEM((G, 1), jnp.float32)]),
        compiler_params=pltpu.CompilerParams(
            dimension_semantics=("parallel", "arbitrary"),
            vmem_limit_bytes=_vmem_limit(4 * G * tm)),
    )(x_grp)

    # Tiny O(B*C) glue: broadcast group stats to channels and fold the GroupNorm affine
    # into per-channel scale/shift so the heavy kernels apply only x*scale + shift.
    gamma, beta = params["gamma"], params["beta"]
    rstd_c = jnp.repeat(rstd_g[..., 0], cs, axis=1)              # (B, C)
    mean_c = jnp.repeat(mean_g[..., 0], cs, axis=1)              # (B, C)
    scale_c = (gamma[None, :] * rstd_c)[..., None]               # (B, C, 1)
    shift_c = (beta[None, :] - mean_c * gamma[None, :] * rstd_c)[..., None]

    # ---------------- stage 2: GroupNorm apply + q/k/v projections ----------------
    tn = _pick_tile(N, (512, 256, 128))
    wq = params["wq"].astype(jnp.bfloat16)
    wk = params["wk"].astype(jnp.bfloat16)
    wv = params["wv"].astype(jnp.bfloat16)
    bq = params["bq"].reshape(C, 1)
    bk = params["bk"].reshape(C, 1)
    bv = params["bv"].reshape(C, 1)

    x_spec = pl.BlockSpec((1, C, tn), lambda b, t: (b, 0, t))
    cvec_spec = pl.BlockSpec((1, C, 1), lambda b, t: (b, 0, 0))
    w_spec = pl.BlockSpec((C, C), lambda b, t: (0, 0))
    bias_spec = pl.BlockSpec((C, 1), lambda b, t: (0, 0))

    q, kt, v = pl.pallas_call(
        functools.partial(qkv_kernel, q_scale=float(C) ** -0.5),
        out_shape=(jax.ShapeDtypeStruct((B, C, N), jnp.bfloat16),
                   jax.ShapeDtypeStruct((B, N, C), jnp.bfloat16),
                   jax.ShapeDtypeStruct((B, C, N), jnp.bfloat16)),
        grid_spec=pltpu.PrefetchScalarGridSpec(
            num_scalar_prefetch=0,
            grid=(B, N // tn),
            in_specs=[x_spec, cvec_spec, cvec_spec,
                      w_spec, bias_spec, w_spec, bias_spec, w_spec, bias_spec],
            out_specs=(pl.BlockSpec((1, C, tn), lambda b, t: (b, 0, t)),
                       pl.BlockSpec((1, tn, C), lambda b, t: (b, t, 0)),
                       pl.BlockSpec((1, C, tn), lambda b, t: (b, 0, t)))),
        compiler_params=pltpu.CompilerParams(
            dimension_semantics=("parallel", "parallel"),
            vmem_limit_bytes=_vmem_limit(10 * C * tn, 8 * C * C)),
    )(x_tok, scale_c, shift_c, wq, bq, wk, bk, wv, bv)

    # ---------------- stage 3: flash attention + proj_out + residual ----------------
    # 256-wide tiles keep the 256x256 MXU of v6e/v7x full; the per-step working set stays
    # ~MiB-scale so the same tiling also fits v5e's 16 MiB default scoped VMEM.
    tq = _pick_tile(N, (256, 128))
    tkv = tq
    wp = params["wp"].astype(jnp.bfloat16)
    bp = params["bp"].reshape(C, 1)

    out_tok = pl.pallas_call(
        flash_attn_kernel,
        out_shape=jax.ShapeDtypeStruct((B, C, N), x_tok.dtype),
        grid_spec=pltpu.PrefetchScalarGridSpec(
            num_scalar_prefetch=0,
            grid=(B, N // tq, N // tkv),
            in_specs=[
                pl.BlockSpec((1, C, tq), lambda b, i, j: (b, 0, i)),    # x (residual)
                pl.BlockSpec((1, C, tq), lambda b, i, j: (b, 0, i)),    # q (pre-scaled)
                pl.BlockSpec((1, tkv, C), lambda b, i, j: (b, j, 0)),   # k^T
                pl.BlockSpec((1, C, tkv), lambda b, i, j: (b, 0, j)),   # v
                pl.BlockSpec((C, C), lambda b, i, j: (0, 0)),           # W_proj
                pl.BlockSpec((C, 1), lambda b, i, j: (0, 0)),           # b_proj
            ],
            out_specs=pl.BlockSpec((1, C, tq), lambda b, i, j: (b, 0, i)),
            scratch_shapes=[pltpu.VMEM((1, tq), jnp.float32),    # running max
                            pltpu.VMEM((1, tq), jnp.float32),    # running sum
                            pltpu.VMEM((C, tq), jnp.float32)]),  # output accumulator
        compiler_params=pltpu.CompilerParams(
            # q-tile axis is parallel too so v7x's two TensorCores stay busy even at B == 1
            dimension_semantics=("parallel", "parallel", "arbitrary"),
            vmem_limit_bytes=_vmem_limit(2 * C * tq * 4,         # x + out (f32)
                                         3 * C * tq * 2,         # q, k^T, v tiles (bf16)
                                         2 * C * C,              # W_proj (bf16)
                                         C * tq * 4)),           # acc scratch
    )(x_tok, q, kt, v, wp, bp)

    return out_tok.reshape(B, C, H, W)


# ----------------------------------------------------------------------------------------
# Synthetic params + pure-JAX reference (mirrors the PyTorch forward)
# ----------------------------------------------------------------------------------------
def init_params(key, C):
    """Conv2d(C, C, 1) weights stored as (C_out, C_in); GroupNorm affine lightly randomized."""
    ks = jax.random.split(key, 10)
    s = 0.05
    return {
        "gamma": 1.0 + s * jax.random.normal(ks[8], (C,), jnp.float32),
        "beta": s * jax.random.normal(ks[9], (C,), jnp.float32),
        "wq": s * jax.random.normal(ks[0], (C, C), jnp.float32),
        "bq": s * jax.random.normal(ks[1], (C,), jnp.float32),
        "wk": s * jax.random.normal(ks[2], (C, C), jnp.float32),
        "bk": s * jax.random.normal(ks[3], (C,), jnp.float32),
        "wv": s * jax.random.normal(ks[4], (C, C), jnp.float32),
        "bv": s * jax.random.normal(ks[5], (C,), jnp.float32),
        "wp": s * jax.random.normal(ks[6], (C, C), jnp.float32),
        "bp": s * jax.random.normal(ks[7], (C,), jnp.float32),
    }


def reference_forward(x, params):
    """Pure-JAX f32 reference replicating the PyTorch forward (NCHW)."""
    B, C, H, W = x.shape
    G, cs = GROUPS, C // GROUPS
    xg = x.reshape(B, G, cs, H, W)
    mu = jnp.mean(xg, axis=(2, 3, 4), keepdims=True)
    var = jnp.mean((xg - mu) ** 2, axis=(2, 3, 4), keepdims=True)
    h = ((xg - mu) / jnp.sqrt(var + EPS)).reshape(B, C, H, W)
    h = h * params["gamma"][None, :, None, None] + params["beta"][None, :, None, None]

    def conv1x1(t, w, b):
        return jnp.einsum("oc,bchw->bohw", w, t) + b[None, :, None, None]

    q = conv1x1(h, params["wq"], params["bq"]).reshape(B, C, -1).transpose(0, 2, 1)  # (B,N,C)
    k = conv1x1(h, params["wk"], params["bk"]).reshape(B, C, -1)                     # (B,C,N)
    v = conv1x1(h, params["wv"], params["bv"]).reshape(B, C, -1)                     # (B,C,N)
    attn = jnp.einsum("bnc,bcm->bnm", q, k) * (C ** -0.5)
    attn = jax.nn.softmax(attn, axis=-1)
    ho = jnp.einsum("bcm,bnm->bcn", v, attn).reshape(B, C, H, W)
    return x + conv1x1(ho, params["wp"], params["bp"])


if __name__ == "__main__":
    B, C, H, W = 2, 64, 32, 32   # C % 32 == 0 for GroupNorm(32, C); N=1024 -> 4x4 flash tiles
    key = jax.random.PRNGKey(0)
    kx, kp = jax.random.split(key)
    x = jax.random.normal(kx, (B, C, H, W), jnp.float32)
    params = init_params(kp, C)

    out = jax.block_until_ready(attention_block(x, params))
    ref = reference_forward(x, params)

    assert out.shape == (B, C, H, W)
    max_err = float(jnp.max(jnp.abs(out - ref)))
    assert max_err < 1e-2, f"max abs err {max_err}"
    print("KERNEL_OK")
</pallas_src>

<mosaic_0001>
module attributes {stable_mosaic.version = 11 : i64} {
  func.func @gn_stats_kernel(%arg0: i32, %arg1: i32, %arg2: memref<1x32x512xf32, #tpu.memory_space<vmem>>, %arg3: memref<1x32x1xf32, #tpu.memory_space<vmem>>, %arg4: memref<1x32x1xf32, #tpu.memory_space<vmem>>, %arg5: memref<32x1xf32, #tpu.memory_space<vmem>>, %arg6: memref<32x1xf32, #tpu.memory_space<vmem>>) attributes {dimension_semantics = [#tpu.dimension_semantics<parallel>, #tpu.dimension_semantics<arbitrary>], iteration_bounds = array<i64: 2, 4>, scalar_prefetch = 0 : i64, scratch_operands = 2 : i64, tpu.core_type = #tpu.core_type<tc>, window_params = [{transform_indices = @transform_0, window_bounds = array<i64: 1, 32, 512>}, {transform_indices = @transform_1, window_bounds = array<i64: 1, 32, 1>}, {transform_indices = @transform_2, window_bounds = array<i64: 1, 32, 1>}]} {
    %c0_i32 = arith.constant 0 : i32
    %0 = arith.cmpi eq, %arg1, %c0_i32 : i32
    %1 = arith.extui %0 : i1 to i32
    %c0_i32_0 = arith.constant 0 : i32
    %2 = arith.cmpi ne, %1, %c0_i32_0 : i32
    scf.if %2 {
      %cst_13 = arith.constant 0.000000e+00 : f32
      %19 = vector.broadcast %cst_13 : f32 to vector<32x1xf32>
      %c0_14 = arith.constant 0 : index
      %c0_15 = arith.constant 0 : index
      %20 = vector.load %arg5[%c0_14, %c0_15] : memref<32x1xf32, #tpu.memory_space<vmem>>, vector<32x1xf32>
      tpu.vector_store %arg5[%c0_14, %c0_15], %19 {strides = array<i32>} : memref<32x1xf32, #tpu.memory_space<vmem>>, vector<32x1xf32>,
      %cst_16 = arith.constant 0.000000e+00 : f32
      %21 = vector.broadcast %cst_16 : f32 to vector<32x1xf32>
      %c0_17 = arith.constant 0 : index
      %c0_18 = arith.constant 0 : index
      %22 = vector.load %arg6[%c0_17, %c0_18] : memref<32x1xf32, #tpu.memory_space<vmem>>, vector<32x1xf32>
      tpu.vector_store %arg6[%c0_17, %c0_18], %21 {strides = array<i32>} : memref<32x1xf32, #tpu.memory_space<vmem>>, vector<32x1xf32>,
    } else {
    }
    %c0 = arith.constant 0 : index
    %c0_1 = arith.constant 0 : index
    %c0_2 = arith.constant 0 : index
    %3 = vector.load %arg2[%c0, %c0_1, %c0_2] : memref<1x32x512xf32, #tpu.memory_space<vmem>>, vector<1x32x512xf32>
    %4 = vector.shape_cast %3 : vector<1x32x512xf32> to vector<32x512xf32>
    %c0_3 = arith.constant 0 : index
    %c0_4 = arith.constant 0 : index
    %5 = vector.load %arg5[%c0_3, %c0_4] : memref<32x1xf32, #tpu.memory_space<vmem>>, vector<32x1xf32>
    %cst = arith.constant dense<0.000000e+00> : vector<32xf32>
    %6 = vector.multi_reduction <add>, %4, %cst [1] : vector<32x512xf32> to vector<32xf32>
    %7 = vector.shape_cast %6 : vector<32xf32> to vector<32x1xf32>
    %8 = arith.addf %5, %7 : vector<32x1xf32>
    %c0_5 = arith.constant 0 : index
    %c0_6 = arith.constant 0 : index
    %9 = vector.load %arg5[%c0_5, %c0_6] : memref<32x1xf32, #tpu.memory_space<vmem>>, vector<32x1xf32>
    tpu.vector_store %arg5[%c0_5, %c0_6], %8 {strides = array<i32>} : memref<32x1xf32, #tpu.memory_space<vmem>>, vector<32x1xf32>,
    %c0_7 = arith.constant 0 : index
    %c0_8 = arith.constant 0 : index
    %10 = vector.load %arg6[%c0_7, %c0_8] : memref<32x1xf32, #tpu.memory_space<vmem>>, vector<32x1xf32>
    %11 = arith.mulf %4, %4 : vector<32x512xf32>
    %cst_9 = arith.constant dense<0.000000e+00> : vector<32xf32>
    %12 = vector.multi_reduction <add>, %11, %cst_9 [1] : vector<32x512xf32> to vector<32xf32>
    %13 = vector.shape_cast %12 : vector<32xf32> to vector<32x1xf32>
    %14 = arith.addf %10, %13 : vector<32x1xf32>
    %c0_10 = arith.constant 0 : index
    %c0_11 = arith.constant 0 : index
    %15 = vector.load %arg6[%c0_10, %c0_11] : memref<32x1xf32, #tpu.memory_space<vmem>>, vector<32x1xf32>
    tpu.vector_store %arg6[%c0_10, %c0_11], %14 {strides = array<i32>} : memref<32x1xf32, #tpu.memory_space<vmem>>, vector<32x1xf32>,
    %c3_i32 = arith.constant 3 : i32
    %16 = arith.cmpi eq, %arg1, %c3_i32 : i32
    %17 = arith.extui %16 : i1 to i32
    %c0_i32_12 = arith.constant 0 : i32
    %18 = arith.cmpi ne, %17, %c0_i32_12 : i32
    scf.if %18 {
      %c0_13 = arith.constant 0 : index
      %c0_14 = arith.constant 0 : index
      %19 = vector.load %arg5[%c0_13, %c0_14] : memref<32x1xf32, #tpu.memory_space<vmem>>, vector<32x1xf32>
      %cst_15 = arith.constant 4.8828125E-4 : f32
      %20 = vector.broadcast %cst_15 : f32 to vector<32x1xf32>
      %21 = arith.mulf %19, %20 : vector<32x1xf32>
      %c0_16 = arith.constant 0 : index
      %c0_17 = arith.constant 0 : index
      %22 = vector.load %arg6[%c0_16, %c0_17] : memref<32x1xf32, #tpu.memory_space<vmem>>, vector<32x1xf32>
      %cst_18 = arith.constant 4.8828125E-4 : f32
      %23 = vector.broadcast %cst_18 : f32 to vector<32x1xf32>
      %24 = arith.mulf %22, %23 : vector<32x1xf32>
      %25 = arith.mulf %21, %21 : vector<32x1xf32>
      %26 = arith.subf %24, %25 : vector<32x1xf32>
      %cst_19 = arith.constant 0.000000e+00 : f32
      %27 = vector.broadcast %cst_19 : f32 to vector<32x1xf32>
      %28 = arith.maximumf %26, %27 : vector<32x1xf32>
      %c0_20 = arith.constant 0 : index
      %c0_21 = arith.constant 0 : index
      %c0_22 = arith.constant 0 : index
      %29 = vector.load %arg3[%c0_20, %c0_21, %c0_22] : memref<1x32x1xf32, #tpu.memory_space<vmem>>, vector<1x32x1xf32>
      %30 = vector.shape_cast %29 : vector<1x32x1xf32> to vector<32x1xf32>
      %31 = vector.shape_cast %21 : vector<32x1xf32> to vector<1x32x1xf32>
      tpu.vector_store %arg3[%c0_20, %c0_21, %c0_22], %31 {strides = array<i32>} : memref<1x32x1xf32, #tpu.memory_space<vmem>>, vector<1x32x1xf32>,
      %cst_23 = arith.constant 9.99999974E-6 : f32
      %32 = vector.broadcast %cst_23 : f32 to vector<32x1xf32>
      %33 = arith.addf %28, %32 : vector<32x1xf32>
      %34 = math.rsqrt %33 : vector<32x1xf32>
      %c0_24 = arith.constant 0 : index
      %c0_25 = arith.constant 0 : index
      %c0_26 = arith.constant 0 : index
      %35 = vector.load %arg4[%c0_24, %c0_25, %c0_26] : memref<1x32x1xf32, #tpu.memory_space<vmem>>, vector<1x32x1xf32>
      %36 = vector.shape_cast %35 : vector<1x32x1xf32> to vector<32x1xf32>
      %37 = vector.shape_cast %34 : vector<32x1xf32> to vector<1x32x1xf32>
      tpu.vector_store %arg4[%c0_24, %c0_25, %c0_26], %37 {strides = array<i32>} : memref<1x32x1xf32, #tpu.memory_space<vmem>>, vector<1x32x1xf32>,
    } else {
    }
    return
  }
  func.func @transform_0(%arg0: i32, %arg1: i32) -> (i32, i32, i32) {
    %c0_i32 = arith.constant 0 : i32
    %c0_i32_0 = arith.constant 0 : i32
    return %arg0, %c0_i32, %arg1 : i32, i32, i32
  }
  func.func @transform_1(%arg0: i32, %arg1: i32) -> (i32, i32, i32) {
    %c0_i32 = arith.constant 0 : i32
    %c0_i32_0 = arith.constant 0 : i32
    %c0_i32_1 = arith.constant 0 : i32
    return %arg0, %c0_i32, %c0_i32_0 : i32, i32, i32
  }
  func.func @transform_2(%arg0: i32, %arg1: i32) -> (i32, i32, i32) {
    %c0_i32 = arith.constant 0 : i32
    %c0_i32_0 = arith.constant 0 : i32
    %c0_i32_1 = arith.constant 0 : i32
    return %arg0, %c0_i32, %c0_i32_0 : i32, i32, i32
  }
}

</mosaic_0001>

<bundles_post_ra>
// kernel: tpu_custom_call.1
= control target key start
LH: loop header
LB: loop body
LE: loop exit
PB: predicated region body
PF: predicated region fallthrough
CT: control target
= control target key end

     0   :  { %8 = vsyncpa [#allocation5], 0  ;;  %s887_s0 = inlined_call_operand.hbm [shape: f32[2,32,2048], index: 0, kind: input, shape index: {}]   ;;  %s888_s1 = inlined_call_operand.vmem [shape: f32[2,32,1], index: 1, kind: output, shape index: {0}]   ;;  %s889_s2 = inlined_call_operand.vmem [shape: f32[2,32,1], index: 2, kind: output, shape index: {1}]  }
   0x1   :  { %10 = vsyncpa [#allocation5 + $0x1], 0  ;;  %s687_s9 = smov 0   ;;  %s689_s10 = smov 0  }
   0x2   :  { %s691_s11 = smov 0   ;;  %s693_s12 = smov 0  }
   0x3   :  { %s695_s13 = smov 0   ;;  %s697_s14 = smov 0  }
   0x4   :  { %s699_s15 = smov 0   ;;  %s701_s16 = smov 0  }
   0x5 LB: > { %s466_s17 = sadd.s32 4294967295, %s665_s16   ;;  %s25_s18 = sadd.s32 1, %s657_s14  ;;  %s665_s16 = sphi %s701_s16, %s16_s16   ;;  %s661_s15 = sphi %s699_s15, %s899_s15   ;;  %s657_s14 = sphi %s697_s14, %s898_s14   ;;  %s653_s13 = sphi %s695_s13, %s897_s13   ;;  %s649_s12 = sphi %s693_s12, %s896_s12   ;;  %s645_s11 = sphi %s691_s11, %s895_s11   ;;  %s641_s10 = sphi %s689_s10, %s894_s10   ;;  %s637_s9 = sphi %s687_s9, %s893_s9  }
   0x6   : > { %p26_p0 = scmp.ge.s32.totalorder %s25_s18, 4  ;;  %s28_s19 = sadd.s32 1, %s661_s15 }
   0x7   : > { %s37_s20 = sadd.s32 1, %s645_s11  ;;  %p44_p1 = scmp.ne.s32.totalorder %s645_s11, %s641_s10 }
   0x8   : > { %s901_s18 = smov (%p26_p0, %s25_s18), 0  ;;  %s903_s19 = smov (!%p26_p0, %s28_s19), %s661_s15 }
   0x9   : > { %s33_s21 = ssub.s32 %s657_s14, %s901_s18  ;;  %p45_p2 = scmp.eq.s32.totalorder %s665_s16, 0 }
   0xa   : > { %p30_p3 = scmp.ge.s32.totalorder %s903_s19, 2  ;;  %p50_p4 = scmp.ne.s32.totalorder %s641_s10, %s637_s9 }
   0xb   : > { %p738_p5 = por %p45_p2, %p44_p1  ;;  %p51_p6 = scmp.eq.s32.totalorder %s466_s17, 0 }
   0xc   : > { %s905_s19 = smov (%p30_p3, %s903_s19), 0  ;;  %p492_p8 = scmp.lt.s32.totalorder %s665_s16, 8 }
   0xd   : > { %p744_p7 = por %p51_p6, %p50_p4  ;;  %s32_s24 = ssub.s32 %s661_s15, %s905_s19 }
   0xe   : > { %s34_s25 = sor.u32 %s33_s21, %s32_s24  ;;  %s126_s26 = sand.u32 1, %s645_s11  }
   0xf   : > { %p35_p9 = scmp.eq.s32.totalorder %s34_s25, 0  ;;  %s470_s27 = sshll.u32 %s126_s26, 7 }
  0x10   : > { %s471_s28 = sshll.u32 %s657_s14, 2  ;;  %s472_s30 = sshll.u32 %s661_s15, 6 }
  0x11   : > { %s754_s29 = scalar_select %p35_p9, %s645_s11, %s37_s20  }
  0x12   : > { %s136_s3 = sadd.s32 %s472_s30, %s471_s28  ;;  %s130_s4 = scalar_lea.vmem [#allocation4], %s470_s27 }
  0x13   : > { %s139_s5 = sshll.u32 %s130_s4, 4  ;;  %s473_s6 = sshll.u32 %s136_s3, 7  ;;  %s757_s5 = int_to_ptr.vmem [resolvable:$true] %s139_s5 }
  0x14   : > { %s762_s9 = scalar_lea.hbm %s887_s0, %s473_s6  ;;  %p768_p10 = pnand %p492_p8, %p738_p5 }
  0x15   : > { %s772_s20 = scalar_lea.sflag [#allocation5], %s126_s26  ;;  %s569_s21 = scalar_lea.hbm %s762_s9, 2048 }
  0x16   : > { %p570_p11 = scmp.ne.s32.totalorder %s762_s9, %s569_s21  ;;  %p571_p12 = pneg %p768_p10 }
  0x17   : > { %s574_s25 = scalar_lea.hbm %s887_s0, 16384  ;;  %p575_p1 = scmp.lt.u32.totalorder %s762_s9, %s887_s0 }
  0x18   : > { %p572_p13 = pnand %p571_p12, %p570_p11  ;;  %p576_p2 = scmp.lt.u32.totalorder %s574_s25, %s569_s21 }
  0x19   : > { %p578_p4 = scmp.lt.u32.totalorder %s569_s21, %s762_s9 }
  0x1a   : > { %p573_p0 = pneg %p572_p13  ;;  %p577_p3 = por %p576_p2, %p575_p1 }
  0x1c   : > { %p579_p5 = por %p578_p4, %p577_p3 }
  0x1e   : > { %p580_p6 = pnand %p579_p5, %p573_p0 }
  0x20   : > { %583 = shalt.err (!%p580_p6)
}
  0x21   : > { %s584_s26 = scalar_lea.vmem %s757_s5, 2048  ;;  %s667_s30 = smov [#allocation4]  }
  0x22   : > { %p585_p8 = scmp.ne.s32.totalorder %s757_s5, %s584_s26  ;;  %s589_s3 = sshll.u32 %s667_s30, 4  ;;  %s590_s3 = int_to_ptr.vmem [resolvable:$false] %s589_s3 }
  0x23   : > { %s591_s4 = scalar_lea.vmem %s590_s3, 4096  ;;  %p592_p13 = scmp.lt.s32.totalorder %s757_s5, %s590_s3 }
  0x24   : > { %p587_p9 = pnand %p585_p8, %p571_p12  ;;  %p593_p1 = scmp.lt.s32.totalorder %s591_s4, %s584_s26 }
  0x26   : > { %p588_p11 = pneg %p587_p9  ;;  %p594_p2 = por %p593_p1, %p592_p13 }
  0x28   : > { %p595_p3 = pnand %p594_p2, %p588_p11 }
  0x2a   : > { %598 = shalt.err (!%p595_p3)
}
  0x2b   : > { %s668_s6 = smov 2048   ;;  %s669_s7 = smov 512  }
  0x2c   : > { %s670_s8 = smov 32   ;;  %p474_p12 = scmp.ge.s32.totalorder %s665_s16, 1 }
  0x2d   : > { %491 = dma.hbm_to_vmem [thread:$0]  (!%p768_p10), %s762_s9, 2048, %s757_s5, %s772_s20, %s668_s6, %s669_s7, %s670_s8  }
  0x2e   : > { %p147_p0 = scmp.lt.s32.totalorder %s665_s16, 9 }
  0x30   : > { %p148_p4 = pnand %p474_p12, %p147_p0 }
  0x31   : > { %s153_s21 = sand.u32 (!%p148_p4), 1, %s641_s10  }
  0x32   : > { %151 = sbr.rel (%p148_p4) target bundleno = 260 (0x104), region = 24  ;;  %s475_s22 = sshll.u32 (!%p148_p4), %s153_s21, 7 }
  0x33   : > { %s154_s24 = scalar_lea.sflag (!%p148_p4), [#allocation5], %s153_s21  ;;  %s803_s25 = scalar_lea.vmem (!%p148_p4), [#allocation4], %s475_s22 }
  0x39   : > { %632 = dma.done.wait (%p744_p7), %s154_s24, 2048  }
  0x3a   : > { %634 = vsyncadd (%p744_p7), %s154_s24, 4294965248  ;;  %p184_p5 = scmp.lt.s32.totalorder %s653_s13, 1  ;;  %p480_p10 = scmp.ne.s32.totalorder %s649_s12, 0 }
  0x3b   : > { %vm198_vm0 = vcmask (!%p480_p10), 7168   ;;  %v671_v0 = vmov (!%p480_p10), 0.0  }
  0x3c   : > { %s907_s13 = smov (!%p184_p5, %s653_s13), 1  ;;  %197 = sbr.rel (%p480_p10) target bundleno = 67 (0x43), region = 32 }
  0x3d   : > { %s484_s5 = sshll.u32 %s907_s13, 5  ;;  %199 = vst.msk [vmem:[#allocation2] sm:$0xff] (!%p480_p10), %vm198_vm0, %v671_v0  ;;  %200 = vst.msk [vmem:[#allocation2 + $0x8] sm:$0xff] (!%p480_p10), %vm198_vm0, %v671_v0 }
  0x3e   : > { %s814_s20 = scalar_lea.vmem %s888_s1, %s484_s5  ;;  %s819_s26 = scalar_lea.vmem %s889_s2, %s484_s5  ;;  %201 = vst.msk [vmem:[#allocation2 + $0x10] sm:$0xff] (!%p480_p10), %vm198_vm0, %v671_v0  ;;  %202 = vst.msk [vmem:[#allocation2 + $0x18] sm:$0xff] (!%p480_p10), %vm198_vm0, %v671_v0 }
  0x3f   : > { %203 = vst.msk [vmem:[#allocation3] sm:$0xff] (!%p480_p10), %vm198_vm0, %v671_v0  ;;  %204 = vst.msk [vmem:[#allocation3 + $0x8] sm:$0xff] (!%p480_p10), %vm198_vm0, %v671_v0 }
  0x40   : > { %205 = vst.msk [vmem:[#allocation3 + $0x10] sm:$0xff] (!%p480_p10), %vm198_vm0, %v671_v0  ;;  %206 = vst.msk [vmem:[#allocation3 + $0x18] sm:$0xff] (!%p480_p10), %vm198_vm0, %v671_v0 }
  0x43 PF: > { %v215_v1 = vld [vmem:[%s803_s25 + $0x40] sm:$0xff]  ;;  %v216_v2 = vld [vmem:[%s803_s25 + $0x48] sm:$0xff]  ;;  %v217_v3 = vld [vmem:[%s803_s25 + $0x50] sm:$0xff]  ;;  %vm251_vm1 = vcmask 7168   ;;  %p481_p7 = scmp.ne.s32.totalorder %s649_s12, 3 }
  0x44   : > { %v237_v4 = vadd.f32 %v216_v2, %v215_v1  ;;  %v268_v5 = vmul.f32 %v215_v1, %v215_v1  ;;  %v207_v6 = vld [vmem:[%s803_s25] sm:$0xff]  ;;  %v208_v7 = vld [vmem:[%s803_s25 + $0x8] sm:$0xff]  ;;  %v218_v8 = vld [vmem:[%s803_s25 + $0x58] sm:$0xff]  ;;  %v269_v9 = vmul.f32 %v216_v2, %v216_v2  ;;  %v270_v16 = vmul.f32 %v217_v3, %v217_v3 }
  0x45   : > { %v209_v10 = vld [vmem:[%s803_s25 + $0x10] sm:$0xff]  ;;  %v227_v11 = vadd.f32 %v208_v7, %v207_v6  ;;  %v260_v12 = vmul.f32 %v207_v6, %v207_v6  ;;  %v261_v13 = vmul.f32 %v208_v7, %v208_v7  ;;  %v219_v14 = vld [vmem:[%s803_s25 + $0x60] sm:$0xff]  ;;  %v210_v17 = vld [vmem:[%s803_s25 + $0x18] sm:$0xff]  ;;  %v271_v52 = vmul.f32 %v218_v8, %v218_v8 }
  0x46   : > { %v238_v15 = vadd.f32 %v237_v4, %v217_v3  ;;  %v262_v18 = vmul.f32 %v209_v10, %v209_v10  ;;  %v220_v19 = vld [vmem:[%s803_s25 + $0x68] sm:$0xff]  ;;  %v221_v20 = vld [vmem:[%s803_s25 + $0x70] sm:$0xff]  ;;  %v272_v21 = vmul.f32 %v219_v14, %v219_v14  ;;  %v211_v24 = vld [vmem:[%s803_s25 + $0x20] sm:$0xff]  ;;  %v263_v35 = vmul.f32 %v210_v17, %v210_v17 }
  0x47   : > { %v228_v22 = vadd.f32 %v227_v11, %v209_v10  ;;  %v242_v23 = vadd.f32 %v220_v19, %v219_v14  ;;  %v212_v25 = vld [vmem:[%s803_s25 + $0x28] sm:$0xff]  ;;  %v213_v26 = vld [vmem:[%s803_s25 + $0x30] sm:$0xff]  ;;  %v276_v27 = vadd.f32 %v261_v13, %v260_v12  ;;  %v273_v28 = vmul.f32 %v220_v19, %v220_v19  ;;  %v222_v30 = vld [vmem:[%s803_s25 + $0x78] sm:$0xff] }
  0x48   : > { %v239_v29 = vadd.f32 %v238_v15, %v218_v8  ;;  %v232_v31 = vadd.f32 %v212_v25, %v211_v24  ;;  %v264_v32 = vmul.f32 %v211_v24, %v211_v24  ;;  %v265_v33 = vmul.f32 %v212_v25, %v212_v25  ;;  %v214_v37 = vld [vmem:[%s803_s25 + $0x38] sm:$0xff]  ;;  %v225_v57 = vld [vmem:[#allocation2 + $0x10] sm:$0xff]  ;;  %v223_v58 = vld [vmem:[#allocation2] sm:$0xff] }
  0x49   : > { %v229_v34 = vadd.f32 %v228_v22, %v210_v17  ;;  %v243_v36 = vadd.f32 %v242_v23, %v221_v20  ;;  %v266_v38 = vmul.f32 %v213_v26, %v213_v26  ;;  %v267_v40 = vmul.f32 %v214_v37, %v214_v37  ;;  %v226_v63 = vld [vmem:[#allocation2 + $0x18] sm:$0xff]  ;;  %v224_v0 = vld [vmem:[#allocation2 + $0x8] sm:$0xff]  ;;  %v256_v6 = vld [vmem:[#allocation3] sm:$0xff] }
  0x4a   : > { %240 = vadd.xlane.f32.xlu1 %v239_v29  ;;  %v233_v39 = vadd.f32 %v232_v31, %v213_v26  ;;  %v281_v41 = vadd.f32 %v265_v33, %v264_v32  ;;  %v274_v42 = vmul.f32 %v221_v20, %v221_v20  ;;  %v277_v44 = vadd.f32 %v276_v27, %v262_v18  ;;  %v259_v11 = vld [vmem:[#allocation3 + $0x18] sm:$0xff]  ;;  %v258_v12 = vld [vmem:[#allocation3 + $0x10] sm:$0xff] }
  0x4b   : > { %230 = vadd.xlane.f32.xlu0 %v229_v34  ;;  %v244_v43 = vadd.f32 %v243_v36, %v222_v30  ;;  %v291_v45 = vadd.f32 %v273_v28, %v272_v21  ;;  %v286_v46 = vadd.f32 %v269_v9, %v268_v5  ;;  %v275_v50 = vmul.f32 %v222_v30, %v222_v30  ;;  %v257_v5 = vld [vmem:[#allocation3 + $0x8] sm:$0xff] }
  0x4c   : > { %v234_v47 = vadd.f32 %v233_v39, %v214_v37  ;;  %v282_v48 = vadd.f32 %v281_v41, %v266_v38  ;;  %v278_v53 = vadd.f32 %v277_v44, %v263_v35 }
  0x4d   : > { %v292_v51 = vadd.f32 %v291_v45, %v274_v42  ;;  %v287_v54 = vadd.f32 %v286_v46, %v270_v16 }
  0x4e   : > { %245 = vadd.xlane.f32.xlu1 %v244_v43  ;;  %v283_v49 = vadd.f32 %v282_v48, %v267_v40 }
  0x4f   : > { %235 = vadd.xlane.f32.xlu0 %v234_v47  ;;  %v293_v55 = vadd.f32 %v292_v51, %v275_v50  ;;  %v288_v56 = vadd.f32 %v287_v54, %v271_v52 }
  0x52   : > { %284 = vadd.xlane.f32.xlu1 %v283_v49 }
  0x53   : > { %279 = vadd.xlane.f32.xlu0 %v278_v53 }
  0x56   : > { %294 = vadd.xlane.f32.xlu1 %v293_v55 }
  0x57   : > { %289 = vadd.xlane.f32.xlu0 %v288_v56 }
  0xd7   : > { %v241_v59 = vpop.xlane.xlu1 %240 }
  0xd8   : > { %v249_v60 = vadd.f32 %v241_v59, %v225_v57  ;;  %v231_v61 = vpop.xlane.xlu0 %230 }
  0xd9   : > { %v247_v62 = vadd.f32 %v231_v61, %v223_v58 }
  0xda   : > { %254 = vst.msk [vmem:[#allocation2 + $0x10] sm:$0xff] %vm251_vm1, %v249_v60 }
  0xdb   : > { %252 = vst.msk [vmem:[#allocation2] sm:$0xff] %vm251_vm1, %v247_v62  ;;  %v246_v1 = vpop.xlane.xlu1 %245 }
  0xdc   : > { %v250_v2 = vadd.f32 %v246_v1, %v226_v63  ;;  %v236_v3 = vpop.xlane.xlu0 %235 }
  0xdd   : > { %v248_v4 = vadd.f32 %v236_v3, %v224_v0 }
  0xde   : > { %255 = vst.msk [vmem:[#allocation2 + $0x18] sm:$0xff] %vm251_vm1, %v250_v2 }
  0xdf   : > { %253 = vst.msk [vmem:[#allocation2 + $0x8] sm:$0xff] %vm251_vm1, %v248_v4  ;;  %v285_v7 = vpop.xlane.xlu1 %284 }
  0xe0   : > { %v297_v8 = vadd.f32 %v285_v7, %v257_v5  ;;  %v280_v9 = vpop.xlane.xlu0 %279 }
  0xe1   : > { %v296_v10 = vadd.f32 %v280_v9, %v256_v6  ;;  %307 = sbr.rel (%p481_p7) target bundleno = 260 (0x104), region = 36  ;;  %v310_v19 = vld [vmem:[#allocation2 + $0x10] sm:$0xff] (!%p481_p7) }
  0xe2   : > { %301 = vst.msk [vmem:[#allocation3 + $0x8] sm:$0xff] %vm251_vm1, %v297_v8  ;;  %v308_v17 = vld [vmem:[#allocation2] sm:$0xff] (!%p481_p7)  ;;  %v314_v22 = vmul.f32 (!%p481_p7), 0.00048828125, %v310_v19 }
  0xe3   : > { %300 = vst.msk [vmem:[#allocation3] sm:$0xff] %vm251_vm1, %v296_v10  ;;  %v295_v13 = vpop.xlane.xlu1 %294  ;;  %v312_v20 = vmul.f32 (!%p481_p7), 0.00048828125, %v308_v17 }
  0xe4   : > { %v299_v14 = vadd.f32 %v295_v13, %v259_v11  ;;  %v290_v15 = vpop.xlane.xlu0 %289  ;;  %v326_v33 = vmul.f32 (!%p481_p7), %v314_v22, %v314_v22  ;;  %338 = vst.msk [vmem:[%s814_s20 + $0x10] sm:$0xff] (!%p481_p7), %vm251_vm1, %v314_v22 }
  0xe5   : > { %v298_v16 = vadd.f32 %v290_v15, %v258_v12  ;;  %v311_v23 = vld [vmem:[#allocation2 + $0x18] sm:$0xff] (!%p481_p7)  ;;  %v324_v31 = vmul.f32 (!%p481_p7), %v312_v20, %v312_v20  ;;  %336 = vst.msk [vmem:[%s814_s20] sm:$0xff] (!%p481_p7), %vm251_vm1, %v312_v20 }
  0xe6   : > { %303 = vst.msk [vmem:[#allocation3 + $0x18] sm:$0xff] %vm251_vm1, %v299_v14  ;;  %v309_v18 = vld [vmem:[#allocation2 + $0x8] sm:$0xff] (!%p481_p7)  ;;  %v315_v26 = vmul.f32 (!%p481_p7), 0.00048828125, %v311_v23 }
  0xe7   : > { %302 = vst.msk [vmem:[#allocation3 + $0x10] sm:$0xff] %vm251_vm1, %v298_v16  ;;  %v313_v21 = vmul.f32 (!%p481_p7), 0.00048828125, %v309_v18 }
  0xe8   : > { %v327_v35 = vmul.f32 %v315_v26, %v315_v26  ;;  %339 = vst.msk [vmem:[%s814_s20 + $0x18] sm:$0xff] %vm251_vm1, %v315_v26 }
  0xe9   : > { %v317_v25 = vld [vmem:[#allocation3 + $0x8] sm:$0xff]  ;;  %v325_v32 = vmul.f32 %v313_v21, %v313_v21  ;;  %337 = vst.msk [vmem:[%s814_s20 + $0x8] sm:$0xff] %vm251_vm1, %v313_v21 }
  0xea   : > { %v316_v24 = vld [vmem:[#allocation3] sm:$0xff]  ;;  %v321_v28 = vmul.f32 0.00048828125, %v317_v25 }
  0xeb   : > { %v320_v27 = vmul.f32 0.00048828125, %v316_v24 }
  0xec   : > { %v329_v38 = vsub.f32 %v321_v28, %v325_v32 }
  0xed   : > { %v319_v30 = vld [vmem:[#allocation3 + $0x18] sm:$0xff]  ;;  %v328_v37 = vsub.f32 %v320_v27, %v324_v31 }
  0xee   : > { %v318_v29 = vld [vmem:[#allocation3 + $0x10] sm:$0xff]  ;;  %v323_v36 = vmul.f32 0.00048828125, %v319_v30  ;;  %v333_v42 = vmax.f32 %v329_v38, 0.0 }
  0xef   : > { %v322_v34 = vmul.f32 0.00048828125, %v318_v29  ;;  %v332_v41 = vmax.f32 %v328_v37, 0.0 }
  0xf0   : > { %v331_v40 = vsub.f32 %v323_v36, %v327_v35  ;;  %v341_v46 = vadd.f32 1e-05, %v333_v42 }
  0xf1   : > { %v330_v39 = vsub.f32 %v322_v34, %v326_v33  ;;  %v340_v45 = vadd.f32 1e-05, %v332_v41 }
  0xf2   : > { %v335_v44 = vmax.f32 %v331_v40, 0.0 }
  0xf3   : > { %v334_v43 = vmax.f32 %v330_v39, 0.0  ;;  %561 = vrsqrt.f32 %v340_v45 }
  0xf4   : > { %v343_v48 = vadd.f32 1e-05, %v335_v44  ;;  %563 = vrsqrt.f32 %v341_v46 }
  0xf5   : > { %v342_v47 = vadd.f32 1e-05, %v334_v43 }
  0xf7   : > { %565 = vrsqrt.f32 %v342_v47 }
  0xf8   : > { %567 = vrsqrt.f32 %v343_v48 }
  0xfd   : > { %v562_v49 = vpop.eup %561 }
  0xfe   : > { %v564_v50 = vpop.eup %563  ;;  %348 = vst.msk [vmem:[%s819_s26] sm:$0xff] %vm251_vm1, %v562_v49 }
  0xff   : > { %349 = vst.msk [vmem:[%s819_s26 + $0x8] sm:$0xff] %vm251_vm1, %v564_v50 }
 0x101   : > { %v566_v51 = vpop.eup %565 }
 0x102   : > { %v568_v52 = vpop.eup %567  ;;  %350 = vst.msk [vmem:[%s819_s26 + $0x10] sm:$0xff] %vm251_vm1, %v566_v51 }
 0x103   : > { %351 = vst.msk [vmem:[%s819_s26 + $0x18] sm:$0xff] %vm251_vm1, %v568_v52 }
 0x104 PF: > { %s16_s16 = sadd.s32 1, %s665_s16   ;;  %s893_s9 = smov %s641_s10 }
 0x105   : > { %p13_p6 = scmp.ge.s32.totalorder %s16_s16, 10   ;;  %s894_s10 = smov %s645_s11 }
 0x106   : > { %s895_s11 = smov %s754_s29  ;;  %s896_s12 = smov %s657_s14 }
 0x107   : > { %s897_s13 = smov %s661_s15  ;;  %s898_s14 = smov %s901_s18 }
 0x108   : > { %s899_s15 = smov %s905_s19  ;;  %15 = sbr.rel (!%p13_p6) target bundleno = 5 (0x5), region = 84 }
 0x10f   :  { %389 = vsyncpa [#allocation5], 1 }
 0x110   :  { %391 = vsyncpa [#allocation5 + $0x1], 1 }

</bundles_post_ra>
